<compile_context>
chip_gen: v7x
topology: tpu7x:2x2x1
jax: 0.10.0
libtpu: 0.0.40
codegen_flags: <defaults>
</compile_context>

<pallas_src>
import jax
import jax.numpy as jnp
from jax.experimental import pallas as pl
from jax.experimental.pallas import tpu as pltpu


def _velocity_kernel(s_ref, u_ref, beta_ref, gamma_ref, v_ref):
    # ds/dt = beta * u - gamma * s  (pure VPU work, f32 throughout).
    s = s_ref[...].astype(jnp.float32)
    u = u_ref[...].astype(jnp.float32)
    beta = beta_ref[...].astype(jnp.float32)     # (1, tn): broadcasts over cells
    gamma = gamma_ref[...].astype(jnp.float32)
    v_ref[...] = (beta * u - gamma * s).astype(v_ref.dtype)


def velocity_forward(
    spliced,
    unspliced,
    beta,
    gamma,
    *,
    max_resident_bytes=8 << 20,      # grid-free path only if everything fits here
    pipeline_vmem_bytes=32 << 20,    # budget for the 6 double-buffered tiles
    max_tile_genes=2048,             # lane tile cap (multiple of 128 when tiling)
    max_tile_cells=2048,             # sublane tile cap (amortizes grid-step cost)
):
    """RNA velocity forward: velocity = beta * unspliced - gamma * spliced.

    spliced, unspliced: (n_cells, n_genes); beta, gamma: (n_genes,).
    Returns a dict with 'velocity' of shape (n_cells, n_genes), matching the
    BaseVelocityModel.forward contract.
    """
    n_cells, n_genes = spliced.shape
    out_dtype = spliced.dtype
    itemsize = jnp.dtype(out_dtype).itemsize

    beta2 = beta.reshape(1, n_genes)
    gamma2 = gamma.reshape(1, n_genes)

    param_bytes = n_genes * (beta.dtype.itemsize + gamma.dtype.itemsize)
    matrix_bytes = n_cells * n_genes * itemsize
    total_bytes = 3 * matrix_bytes + param_bytes   # 2 reads + 1 write + params

    cost = pl.CostEstimate(
        flops=3 * n_cells * n_genes,               # 2 mul + 1 sub per element
        transcendentals=0,
        bytes_accessed=total_bytes,
    )

    if total_bytes <= max_resident_bytes:
        # Tiny case: no grid, no pipelining machinery — whole (unpadded) arrays
        # resident in VMEM for the single invocation.  Full-dim blocks are
        # always layout-legal.
        velocity = pl.pallas_call(
            _velocity_kernel,
            out_shape=jax.ShapeDtypeStruct((n_cells, n_genes), out_dtype),
            in_specs=[pl.BlockSpec(memory_space=pltpu.MemorySpace.VMEM)] * 4,
            out_specs=pl.BlockSpec(memory_space=pltpu.MemorySpace.VMEM),
            cost_estimate=cost,
        )(spliced, unspliced, beta2, gamma2)
    else:
        # Gene (lane) tile: full dim when small (legal full-dim last-axis block
        # even if not 128-aligned), otherwise a lane-dense multiple of 128.
        if n_genes <= max_tile_genes:
            tn = n_genes
        else:
            tn = max(128, (max_tile_genes // 128) * 128)
        grid_n = pl.cdiv(n_genes, tn)

        # Cell (sublane) tile from the VMEM pipeline budget: with default
        # double-buffering there are ~6 tile-sized buffers (s, u, v x 2).
        tm = pipeline_vmem_bytes // (6 * tn * itemsize)
        tm = max(8, (tm // 8) * 8)
        tm = min(tm, max_tile_cells, pl.cdiv(n_cells, 8) * 8)
        grid_m = pl.cdiv(n_cells, tm)

        # Explicit scoped-VMEM limit: comfortably above the pipeline budget,
        # with headroom under v7x's 64 MiB physical VMEM.
        vmem_limit = min(max(int(pipeline_vmem_bytes) + (8 << 20), 48 << 20), 56 << 20)

        velocity = pl.pallas_call(
            _velocity_kernel,
            out_shape=jax.ShapeDtypeStruct((n_cells, n_genes), out_dtype),
            grid=(grid_m, grid_n),
            in_specs=[
                pl.BlockSpec((tm, tn), lambda i, j: (i, j)),
                pl.BlockSpec((tm, tn), lambda i, j: (i, j)),
                pl.BlockSpec((1, tn), lambda i, j: (0, j)),   # beta: gene-tiled, cell-resident
                pl.BlockSpec((1, tn), lambda i, j: (0, j)),   # gamma
            ],
            out_specs=pl.BlockSpec((tm, tn), lambda i, j: (i, j)),
            compiler_params=pltpu.CompilerParams(
                dimension_semantics=("parallel", "parallel"),
                vmem_limit_bytes=vmem_limit,
            ),
            cost_estimate=cost,
        )(spliced, unspliced, beta2, gamma2)

    # forward() contract: dict with 'velocity' (plus the per-gene ODE params).
    return {"velocity": velocity, "beta": beta, "gamma": gamma}


if __name__ == "__main__":
    # Small shapes implied by the module: (n_cells, n_genes).  n_cells is not a
    # multiple of 8 and n_genes not a multiple of 128 to exercise the ragged /
    # masked tile handling (no wrapper-side padding anymore).
    n_cells, n_genes = 36, 200

    key = jax.random.PRNGKey(0)
    ks, ku, kb, kg = jax.random.split(key, 4)
    spliced = jnp.abs(jax.random.normal(ks, (n_cells, n_genes), dtype=jnp.float32))
    unspliced = jnp.abs(jax.random.normal(ku, (n_cells, n_genes), dtype=jnp.float32))
    beta = jnp.abs(jax.random.normal(kb, (n_genes,), dtype=jnp.float32)) + 0.1
    gamma = jnp.abs(jax.random.normal(kg, (n_genes,), dtype=jnp.float32)) + 0.1

    ref = beta[None, :] * unspliced - gamma[None, :] * spliced

    # 1) Default path: small problem -> grid-free whole-array-in-VMEM.
    out = velocity_forward(spliced, unspliced, beta, gamma)
    vel = jax.block_until_ready(out["velocity"])
    assert vel.shape == (n_cells, n_genes)
    assert jnp.allclose(vel, ref, atol=1e-5, rtol=1e-5)

    # 2) Force the tiled path (cell tiling only): ragged last cell tile.
    out_t = velocity_forward(
        spliced, unspliced, beta, gamma,
        max_resident_bytes=0, pipeline_vmem_bytes=64 * 1024,
    )
    vel_t = jax.block_until_ready(out_t["velocity"])
    assert jnp.allclose(vel_t, ref, atol=1e-5, rtol=1e-5)

    # 3) Force 2-D tiling (cells x genes): ragged last tiles on both axes.
    out_g = velocity_forward(
        spliced, unspliced, beta, gamma,
        max_resident_bytes=0, pipeline_vmem_bytes=64 * 1024, max_tile_genes=128,
    )
    vel_g = jax.block_until_ready(out_g["velocity"])
    assert jnp.allclose(vel_g, ref, atol=1e-5, rtol=1e-5)

    print("KERNEL_OK")
</pallas_src>

<mosaic_0001>
module attributes {stable_mosaic.version = 11 : i64} {
  func.func @_velocity_kernel(%arg0: memref<36x200xf32, #tpu.memory_space<vmem>>, %arg1: memref<36x200xf32, #tpu.memory_space<vmem>>, %arg2: memref<1x200xf32, #tpu.memory_space<vmem>>, %arg3: memref<1x200xf32, #tpu.memory_space<vmem>>, %arg4: memref<36x200xf32, #tpu.memory_space<vmem>>) attributes {dimension_semantics = [], scalar_prefetch = 0 : i64, scratch_operands = 0 : i64, tpu.core_type = #tpu.core_type<tc>} {
    %c0 = arith.constant 0 : index
    %c0_0 = arith.constant 0 : index
    %0 = vector.load %arg0[%c0, %c0_0] : memref<36x200xf32, #tpu.memory_space<vmem>>, vector<36x200xf32>
    %c0_1 = arith.constant 0 : index
    %c0_2 = arith.constant 0 : index
    %1 = vector.load %arg1[%c0_1, %c0_2] : memref<36x200xf32, #tpu.memory_space<vmem>>, vector<36x200xf32>
    %c0_3 = arith.constant 0 : index
    %c0_4 = arith.constant 0 : index
    %2 = vector.load %arg2[%c0_3, %c0_4] : memref<1x200xf32, #tpu.memory_space<vmem>>, vector<1x200xf32>
    %c0_5 = arith.constant 0 : index
    %c0_6 = arith.constant 0 : index
    %3 = vector.load %arg3[%c0_5, %c0_6] : memref<1x200xf32, #tpu.memory_space<vmem>>, vector<1x200xf32>
    %4 = vector.broadcast %2 : vector<1x200xf32> to vector<36x200xf32>
    %5 = arith.mulf %4, %1 : vector<36x200xf32>
    %6 = vector.broadcast %3 : vector<1x200xf32> to vector<36x200xf32>
    %7 = arith.mulf %6, %0 : vector<36x200xf32>
    %8 = arith.subf %5, %7 : vector<36x200xf32>
    %c0_7 = arith.constant 0 : index
    %c0_8 = arith.constant 0 : index
    %9 = vector.load %arg4[%c0_7, %c0_8] : memref<36x200xf32, #tpu.memory_space<vmem>>, vector<36x200xf32>
    tpu.vector_store %arg4[%c0_7, %c0_8], %8 {strides = array<i32>} : memref<36x200xf32, #tpu.memory_space<vmem>>, vector<36x200xf32>,
    return
  }
}

</mosaic_0001>

<bundles_post_ra>
// kernel: tpu_custom_call.1
= control target key start
LH: loop header
LB: loop body
LE: loop exit
PB: predicated region body
PF: predicated region fallthrough
CT: control target
= control target key end

     0   :  { %9 = vsyncpa [#allocation3], 0  ;;  %s312_s0 = inlined_call_operand.hbm [shape: f32[36,200], index: 0, kind: input, shape index: {}]   ;;  %s313_s1 = inlined_call_operand.hbm [shape: f32[36,200], index: 1, kind: input, shape index: {}]   ;;  %s314_s2 = inlined_call_operand.vmem [shape: f32[1,200], index: 2, kind: input, shape index: {}]   ;;  %s315_s3 = inlined_call_operand.vmem [shape: f32[1,200], index: 3, kind: input, shape index: {}]   ;;  %s316_s4 = inlined_call_operand.hbm [shape: f32[36,200], index: 4, kind: output, shape index: {}]  }
   0x1   :  { %10 = vsyncpa [#allocation6], 0 }
   0x2   :  { %11 = vsyncpa [#allocation4], 0  ;;  %s227_s15 = smov [#allocation2]   ;;  %s155_s19 = scalar_lea.hbm %s312_s0, 1280 }
   0x3   :  { %s17_s16 = sshll.u32 %s227_s15, 4  ;;  %p156_p0 = scmp.ne.s32.totalorder %s312_s0, %s155_s19  ;;  %s18_s16 = int_to_ptr.vmem [resolvable:$true] %s17_s16 }
   0x4   :  { %p159_p1 = scmp.lt.u32.totalorder %s155_s19, %s312_s0 }
   0x6   :  { %p161_p2 = pnand %p159_p1, %p156_p0 }
   0x8   :  { %164 = shalt.err (!%p161_p2)
}
   0x9   :  { %s165_s24 = scalar_lea.vmem %s18_s16, 1280  ;;  %p170_p4 = scmp.lt.s32.totalorder %s18_s16, %s18_s16 }
   0xa   :  { %p166_p3 = scmp.ne.s32.totalorder %s18_s16, %s165_s24  ;;  %p171_p5 = scmp.lt.s32.totalorder %s165_s24, %s165_s24 }
   0xc   :  { %p172_p6 = por %p171_p5, %p170_p4 }
   0xe   :  { %p173_p7 = pnand %p172_p6, %p166_p3 }
  0x10   :  { %176 = shalt.err (!%p173_p7)
}
  0x11   :  { %s228_s25 = smov 256   ;;  %s229_s26 = smov 16  }
  0x12   :  { %23 = dma.hbm_to_vmem [thread:$0]  %s312_s0, 1280, %s18_s16, [#allocation3], %s228_s25, %s228_s25, %s229_s26  }
  0x13   :  { %s230_s29 = smov [#allocation5]   ;;  %s177_s7 = scalar_lea.hbm %s313_s1, 1280 }
  0x14   :  { %s29_s30 = sshll.u32 %s230_s29, 4  ;;  %p178_p8 = scmp.ne.s32.totalorder %s313_s1, %s177_s7  ;;  %s30_s30 = int_to_ptr.vmem [resolvable:$true] %s29_s30 }
  0x15   :  { %p181_p9 = scmp.lt.u32.totalorder %s177_s7, %s313_s1 }
  0x17   :  { %p183_p10 = pnand %p181_p9, %p178_p8 }
  0x19   :  { %186 = shalt.err (!%p183_p10)
}
  0x1a   :  { %s187_s12 = scalar_lea.vmem %s30_s30, 1280  ;;  %p192_p12 = scmp.lt.s32.totalorder %s30_s30, %s30_s30 }
  0x1b   :  { %p188_p11 = scmp.ne.s32.totalorder %s30_s30, %s187_s12  ;;  %p193_p13 = scmp.lt.s32.totalorder %s187_s12, %s187_s12 }
  0x1d   :  { %p194_p0 = por %p193_p13, %p192_p12 }
  0x1f   :  { %p195_p1 = pnand %p194_p0, %p188_p11 }
  0x21   :  { %198 = shalt.err (!%p195_p1)
}
  0x22   :  { %35 = dma.hbm_to_vmem [thread:$0]  %s313_s1, 1280, %s30_s30, [#allocation6], %s228_s25, %s228_s25, %s229_s26  }
  0x23   :  { %221 = dma.done.wait [#allocation3], 1280  }
  0x24   :  { %222 = vsyncadd [#allocation3], 4294966016 }
  0x25   :  { %223 = dma.done.wait [#allocation6], 1280  }
  0x26   :  { %224 = vsyncadd [#allocation6], 4294966016  ;;  %v69_v0 = vlaneseq  ;;  %v46_v4 = vld [vmem:[#allocation2] sm:$0xff]  ;;  %v56_v5 = vld [vmem:[#allocation5] sm:$0xff]  ;;  %vm121_vm0 = vcmask 588800   ;;  %s231_s1 = smov [#allocation7]  }
  0x27   :  { %v66_v6 = vld [vmem:[%s314_s2] sm:$0x3]  ;;  %v47_v10 = vld [vmem:[#allocation2 + $0x8] sm:$0xff]  ;;  %v57_v11 = vld [vmem:[#allocation5 + $0x8] sm:$0xff]  ;;  %s137_s2 = sshll.u32 %s231_s1, 4  ;;  %vm130_vm1 = vcmask 584704   ;;  %s138_s2 = int_to_ptr.vmem [resolvable:$true] %s137_s2 }
  0x28   :  { %v70_v1 = vshrl.u32 %v69_v0, 7  ;;  %v67_v7 = vld [vmem:[%s315_s3] sm:$0x3]  ;;  %v48_v14 = vld [vmem:[#allocation2 + $0x10] sm:$0xff]  ;;  %v49_v16 = vld [vmem:[#allocation2 + $0x18] sm:$0xff]  ;;  %s199_s3 = scalar_lea.vmem %s138_s2, 1280  ;;  %p204_p3 = scmp.lt.s32.totalorder %s138_s2, %s138_s2 }
  0x29   :  { %v58_v15 = vld [vmem:[#allocation5 + $0x10] sm:$0xff]  ;;  %v59_v20 = vld [vmem:[#allocation5 + $0x18] sm:$0xff]  ;;  %v60_v22 = vld [vmem:[#allocation5 + $0x20] sm:$0xff]  ;;  %p200_p2 = scmp.ne.s32.totalorder %s138_s2, %s199_s3  ;;  %p205_p4 = scmp.lt.s32.totalorder %s199_s3, %s199_s3 }
  0x2a   :  { %v71_v2 = vsub.s32 0, %v70_v1  ;;  %v75_v3 = vsub.s32 1, %v70_v1  ;;  %v50_v21 = vld [vmem:[#allocation2 + $0x20] sm:$0xff]  ;;  %v51_v27 = vld [vmem:[#allocation2 + $0x28] sm:$0xff]  ;;  %v61_v28 = vld [vmem:[#allocation5 + $0x28] sm:$0xff] }
  0x2b   :  { %v52_v29 = vld [vmem:[#allocation2 + $0x30] sm:$0xff]  ;;  %v62_v34 = vld [vmem:[#allocation5 + $0x30] sm:$0xff]  ;;  %v53_v35 = vld [vmem:[#allocation2 + $0x38] sm:$0xff]  ;;  %p206_p5 = por %p205_p4, %p204_p3 }
  0x2c   :  { %v72_v8 = vrot.slane %v66_v6, %v71_v2  ;;  %v76_v9 = vrot.slane %v66_v6, %v75_v3  ;;  %v93_v12 = vrot.slane %v67_v7, %v71_v2  ;;  %v97_v13 = vrot.slane %v67_v7, %v75_v3  ;;  %v63_v36 = vld [vmem:[#allocation5 + $0x38] sm:$0xff]  ;;  %v54_v41 = vld [vmem:[#allocation2 + $0x40] sm:$0xf]  ;;  %v64_v42 = vld [vmem:[#allocation5 + $0x40] sm:$0xf] }
  0x2d   :  { %v55_v43 = vld [vmem:[#allocation2 + $0x48] sm:$0xf]  ;;  %v65_v48 = vld [vmem:[#allocation5 + $0x48] sm:$0xf]  ;;  %p207_p6 = pnand %p206_p5, %p200_p2 }
  0x2e   :  { %v79_v17 = vmul.f32 %v72_v8, %v56_v5  ;;  %v80_v18 = vmul.f32 %v76_v9, %v57_v11  ;;  %v81_v19 = vmul.f32 %v72_v8, %v58_v15  ;;  %v100_v23 = vmul.f32 %v93_v12, %v46_v4 }
  0x2f   :  { %v101_v24 = vmul.f32 %v97_v13, %v47_v10  ;;  %v102_v25 = vmul.f32 %v93_v12, %v48_v14  ;;  %v82_v26 = vmul.f32 %v76_v9, %v59_v20  ;;  %v103_v30 = vmul.f32 %v97_v13, %v49_v16 }
  0x30   :  { %v83_v31 = vmul.f32 %v72_v8, %v60_v22  ;;  %v104_v32 = vmul.f32 %v93_v12, %v50_v21  ;;  %v84_v33 = vmul.f32 %v76_v9, %v61_v28  ;;  %v110_v37 = vsub.f32 %v79_v17, %v100_v23 }
  0x31   :  { %v111_v38 = vsub.f32 %v80_v18, %v101_v24  ;;  %v112_v39 = vsub.f32 %v81_v19, %v102_v25  ;;  %v105_v40 = vmul.f32 %v97_v13, %v51_v27  ;;  %v113_v44 = vsub.f32 %v82_v26, %v103_v30 }
  0x32   :  { %v114_v45 = vsub.f32 %v83_v31, %v104_v32  ;;  %v85_v46 = vmul.f32 %v72_v8, %v62_v34  ;;  %v106_v47 = vmul.f32 %v93_v12, %v52_v29  ;;  %120 = vst [vmem:[#allocation7] sm:$0xff] %v110_v37  ;;  %v86_v50 = vmul.f32 %v76_v9, %v63_v36 }
  0x33   :  { %122 = vst.msk [vmem:[#allocation7 + $0x8] sm:$0xff] %vm121_vm0, %v111_v38  ;;  %123 = vst [vmem:[#allocation7 + $0x10] sm:$0xff] %v112_v39  ;;  %v115_v49 = vsub.f32 %v84_v33, %v105_v40  ;;  %v107_v51 = vmul.f32 %v97_v13, %v53_v35  ;;  %v87_v52 = vmul.f32 %v72_v8, %v64_v42 }
  0x34   :  { %124 = vst.msk [vmem:[#allocation7 + $0x18] sm:$0xff] %vm121_vm0, %v113_v44  ;;  %125 = vst [vmem:[#allocation7 + $0x20] sm:$0xff] %v114_v45  ;;  %v116_v53 = vsub.f32 %v85_v46, %v106_v47  ;;  %v108_v54 = vmul.f32 %v93_v12, %v54_v41  ;;  %v88_v55 = vmul.f32 %v76_v9, %v65_v48 }
  0x35   :  { %v109_v56 = vmul.f32 %v97_v13, %v55_v43  ;;  %126 = vst.msk [vmem:[#allocation7 + $0x28] sm:$0xff] %vm121_vm0, %v115_v49  ;;  %v117_v57 = vsub.f32 %v86_v50, %v107_v51 }
  0x36   :  { %127 = vst [vmem:[#allocation7 + $0x30] sm:$0xff] %v116_v53  ;;  %v118_v58 = vsub.f32 %v87_v52, %v108_v54 }
  0x37   :  { %v119_v59 = vsub.f32 %v88_v55, %v109_v56  ;;  %128 = vst.msk [vmem:[#allocation7 + $0x38] sm:$0xff] %vm121_vm0, %v117_v57 }
  0x38   :  { %129 = vst [vmem:[#allocation7 + $0x40] sm:$0xf] %v118_v58 }
  0x39   :  { %131 = vst.msk [vmem:[#allocation7 + $0x48] sm:$0xf] %vm130_vm1, %v119_v59 }
  0x3a   :  { %210 = shalt.err (!%p207_p6)
}
  0x3b   :  { %s211_s20 = scalar_lea.hbm %s316_s4, 1280 }
  0x3c   :  { %p212_p7 = scmp.ne.s32.totalorder %s316_s4, %s211_s20  ;;  %p215_p8 = scmp.lt.u32.totalorder %s211_s20, %s316_s4 }
  0x3e   :  { %p217_p9 = pnand %p215_p8, %p212_p7 }
  0x40   :  { %220 = shalt.err (!%p217_p9)
}
  0x41   :  { %143 = dma.vmem_to_hbm [thread:$0]  %s138_s2, 1280, %s316_s4, [#allocation4], %s228_s25, %s228_s25, %s229_s26  }
  0x42   :  { %225 = dma.done.wait [#allocation4], 1280  }
  0x43   :  { %226 = vsyncadd [#allocation4], 4294966016 }
  0x44   :  { %147 = vsyncpa [#allocation3], 1 }
  0x45   :  { %148 = vsyncpa [#allocation6], 1 }
  0x46   :  { %149 = vsyncpa [#allocation4], 1 }

</bundles_post_ra>
